<compile_context>
chip_gen: v6e
topology: v6e:2x2x1
jax: 0.10.0
libtpu: 0.0.40
codegen_flags: <defaults>
</compile_context>

<pallas_src>
import functools

import jax
import jax.numpy as jnp
import numpy as np
from jax.experimental import pallas as pl
from jax.experimental.pallas import tpu as pltpu


def _gat_gate_kernel(x_ref, adj_ref, wt_ref, bw_ref, wa_ref, bwa_ref,
                     wgx_ref, wgh_ref, bg_ref, o_ref, *, attn_dtype):
    bt, n, fp = x_ref.shape

    x = x_ref[...]                           # (bt, n, Fp) lane-dense, zero-padded
    adj = adj_ref[...].astype(jnp.float32)   # (bt, n, n), widened in-kernel

    # Two independent (bt*n, Fp) x (Fp, Fp) MXU matmuls sharing the same LHS:
    #   h  = x @ W^T           + b_W
    #   hA = x @ (W^T @ A_sym) + b_W @ A_sym     (A_sym = A + A^T, host fold)
    x2d = x.reshape(bt * n, fp)
    h2d = jnp.dot(x2d, wt_ref[...], preferred_element_type=jnp.float32) + bw_ref[...]
    hA2d = jnp.dot(x2d, wa_ref[...], preferred_element_type=jnp.float32) + bwa_ref[...]
    h = h2d.reshape(bt, n, fp)
    hA = hA2d.reshape(bt, n, fp)

    # e[b,j,k] = sum_l hA[b,j,l] * h[b,k,l]  (== e + e^T of the reference,
    # because A_sym was folded into hA on the host -- no in-kernel transpose).
    e = jnp.einsum('bjl,bkl->bjk', hA.astype(attn_dtype), h.astype(attn_dtype),
                   preferred_element_type=jnp.float32)

    # Masked softmax over the row ("j") axis == torch.softmax(dim=1).
    att = jnp.where(adj > 0, e, jnp.full_like(e, -9e15))
    att = jnp.exp(att - jnp.max(att, axis=1, keepdims=True))
    denom = jnp.sum(att, axis=1, keepdims=True)
    inv = pl.reciprocal(denom, approx=True)       # EUP slot (effectively free)
    inv = inv * (2.0 - denom * inv)               # one Newton step -> ~f32 accurate
    att = att * inv
    att = att * adj

    # h_prime = relu(att @ h)
    h_prime = jnp.einsum('bjk,bkl->bjl', att.astype(attn_dtype),
                         h.astype(attn_dtype), preferred_element_type=jnp.float32)
    h_prime = jnp.maximum(h_prime, 0.0)

    # gate(concat([x, h_prime], -1)): width-1 output -> VPU mul + ONE lane reduce.
    gate = jnp.sum(x * wgx_ref[...] + h_prime * wgh_ref[...],
                   axis=-1, keepdims=True) + bg_ref[0, 0]
    coeff = jax.nn.sigmoid(gate)                  # (bt, n, 1)

    o_ref[...] = coeff * x + (1.0 - coeff) * h_prime


def _round_up(v, m):
    return ((v + m - 1) // m) * m


def _tpu_generation_hints():
    """(vmem_budget_bytes, min_grid_steps) tuned per TPU generation."""
    try:
        kind = jax.devices()[0].device_kind.lower()
    except Exception:
        kind = ""
    if ("v7" in kind) or ("tpu7" in kind):
        # v7x: 64 MiB VMEM per TC, 2 TCs/chip -> smaller blocks, >= 2 steps/TC.
        return 48 * 1024 * 1024, 4
    # v5e / v6e: 128 MiB physical VMEM, 1 TC per chip.
    return 96 * 1024 * 1024, 2


def _block_vmem_bytes(bt, n, fp, adj_itemsize):
    """Rough per-step VMEM footprint: double-buffered blocks + params + temps."""
    xo = bt * n * fp * 4                        # x block == out block (f32)
    adjb = bt * n * n * adj_itemsize
    params = 2 * fp * fp * 4 + 4 * fp * 4
    pipelined = 2 * (2 * xo + adjb) + 2 * params
    temps = 3 * bt * n * n * 4 + 6 * bt * n * fp * 4   # e/att/mask + h/hA/h' etc.
    return pipelined + temps


def _pick_block_b(B, n, fp, adj_itemsize, vmem_budget, min_grid, target_rows=1024):
    """Largest divisor of B whose fused block fits target_rows and the VMEM
    budget, preferring a grid with >= min_grid steps (>= 2 per TC on v7x)."""
    divisors = [d for d in range(1, B + 1) if B % d == 0]
    cands = [d for d in divisors
             if d * n <= target_rows
             and _block_vmem_bytes(d, n, fp, adj_itemsize) <= vmem_budget]
    cands = cands or [1]
    pref = [d for d in cands if B // d >= min_grid]
    return max(pref) if pref else max(cands)


def prepare_params(w_t, b_w, a_mat, w_g, b_g):
    """Host-side parameter prep (do once per layer, reuse across calls):
    fold A_sym = A + A^T into the weight and zero-pad to lane-dense Fp.
    w_t is W^T of the nn.Linear (shape (F, F)), b_w its bias, a_mat is A,
    w_g / b_g the gate Linear's weight^T (2F, 1) and bias."""
    w_t = jnp.asarray(w_t, jnp.float32)
    F = w_t.shape[0]
    assert w_t.shape == (F, F), "GNN_DOVE uses n_in_feature == n_out_feature"
    Fp = _round_up(F, 128)
    b_w = jnp.asarray(b_w, jnp.float32).reshape(1, F)
    a_sym = jnp.asarray(a_mat, jnp.float32)
    a_sym = a_sym + a_sym.T                  # e + e^T fold
    wa = w_t @ a_sym                         # W^T @ A_sym fold (kills serial chain)
    bwa = b_w @ a_sym
    wg = jnp.asarray(w_g, jnp.float32).reshape(2 * F)
    bg = jnp.asarray(b_g, jnp.float32).reshape(1, 1)

    pad2 = [(0, Fp - F), (0, Fp - F)]
    padr = [(0, 0), (0, Fp - F)]
    return dict(
        F=F, Fp=Fp,
        wt=jnp.pad(w_t, pad2), bw=jnp.pad(b_w, padr),
        wa=jnp.pad(wa, pad2), bwa=jnp.pad(bwa, padr),
        wgx=jnp.pad(wg[:F].reshape(1, F), padr),    # gate weight, x half
        wgh=jnp.pad(wg[F:].reshape(1, F), padr),    # gate weight, h_prime half
        bg=bg,
    )


def gat_gate_padded(x_p, adj_p, params, *, block_b=None, attn_dtype=jnp.float32):
    """Padded-IO entry point. x_p: (B, Np, Fp) f32 with features zero-padded to
    Fp (multiple of 128) and nodes to Np (multiple of 8); adj_p: (B, Np, Np) in
    any dtype with padded rows/cols == 0. Returns the padded (B, Np, Fp) output
    so multi-layer models avoid per-layer pad/slice HBM traffic."""
    B, Np, Fp = x_p.shape
    assert Np % 8 == 0 and Fp % 128 == 0
    assert adj_p.shape == (B, Np, Np)
    assert params["Fp"] == Fp

    vmem_budget, min_grid = _tpu_generation_hints()
    bt = block_b or _pick_block_b(B, Np, Fp, jnp.dtype(adj_p.dtype).itemsize,
                                  vmem_budget, min_grid)
    assert B % bt == 0, "block_b must divide the batch size"

    batch_spec = lambda shape: pl.BlockSpec(shape, lambda b: (b, 0, 0))
    # Invariant parameters: constant index map -> DMA'd only once by Pallas.
    # TODO(synk): pipeline_mode=pl.Buffered(1) would halve their VMEM footprint;
    # irrelevant at Fp=128, revisit if F grows.
    param_spec = lambda shape: pl.BlockSpec(shape, lambda b: (0, 0))

    kernel = functools.partial(_gat_gate_kernel, attn_dtype=attn_dtype)

    return pl.pallas_call(
        kernel,
        out_shape=jax.ShapeDtypeStruct((B, Np, Fp), jnp.float32),
        grid_spec=pltpu.PrefetchScalarGridSpec(
            num_scalar_prefetch=0,
            grid=(B // bt,),
            in_specs=[
                batch_spec((bt, Np, Fp)),    # x (lane-dense, padded)
                batch_spec((bt, Np, Np)),    # adj (caller dtype)
                param_spec((Fp, Fp)),        # W^T
                param_spec((1, Fp)),         # b_W
                param_spec((Fp, Fp)),        # W^T @ A_sym
                param_spec((1, Fp)),         # b_W @ A_sym
                param_spec((1, Fp)),         # gate weight, x half
                param_spec((1, Fp)),         # gate weight, h_prime half
                pl.BlockSpec(memory_space=pltpu.MemorySpace.SMEM),  # gate bias
            ],
            out_specs=batch_spec((bt, Np, Fp)),
        ),
        compiler_params=pltpu.CompilerParams(
            dimension_semantics=("parallel",),
            vmem_limit_bytes=vmem_budget),
    )(x_p, adj_p, params["wt"], params["bw"], params["wa"], params["bwa"],
      params["wgx"], params["wgh"], params["bg"])


def gat_gate(x, adj, w_t, b_w, a_mat, w_g, b_g, *, block_b=None,
             attn_dtype=jnp.float32):
    """Single-layer convenience wrapper: pads, runs the kernel, slices back.
    Multi-layer models should call prepare_params()/gat_gate_padded() directly
    and keep activations feature-padded between layers."""
    B, N, F = x.shape
    params = prepare_params(w_t, b_w, a_mat, w_g, b_g)
    assert params["F"] == F
    Fp = params["Fp"]
    Np = _round_up(N, 128) if N > 128 else _round_up(N, 8)

    x_p = jnp.pad(x.astype(jnp.float32), [(0, 0), (0, Np - N), (0, Fp - F)])
    adj_p = jnp.pad(adj, [(0, 0), (0, Np - N), (0, Np - N)])  # padded rows/cols = 0
    out_p = gat_gate_padded(x_p, adj_p, params, block_b=block_b,
                            attn_dtype=attn_dtype)
    return out_p[:, :N, :F]


def _reference(x, adj, w_t, b_w, a_mat, w_g, b_g):
    h = x @ w_t + b_w                                  # (B, N, F)
    e = jnp.einsum('ijl,ikl->ijk', h @ a_mat, h)
    e = e + jnp.transpose(e, (0, 2, 1))
    att = jnp.where(adj > 0, e, jnp.full_like(e, -9e15))
    att = jax.nn.softmax(att, axis=1)
    att = att * adj
    h_prime = jax.nn.relu(jnp.einsum('aij,ajk->aik', att, h))
    gate_in = jnp.concatenate([x, h_prime], axis=-1)
    coeff = jax.nn.sigmoid(gate_in @ w_g + b_g)        # (B, N, 1)
    return coeff * x + (1.0 - coeff) * h_prime


if __name__ == "__main__":
    B, N, F = 4, 16, 32   # n_in_feature == n_out_feature == F
    key = jax.random.PRNGKey(0)
    kx, kadj, kw, kbw, ka, kwg, kbg = jax.random.split(key, 7)

    x = jax.random.normal(kx, (B, N, F), dtype=jnp.float32)
    adj_raw = jax.random.uniform(kadj, (B, N, N), dtype=jnp.float32)
    adj = (adj_raw > 0.5).astype(jnp.float32)
    adj = jnp.maximum(adj, jnp.transpose(adj, (0, 2, 1)))          # symmetric
    adj = adj.at[:, jnp.arange(N), jnp.arange(N)].set(1.0)          # self loops

    # Deterministic synthetic parameters (module's A is zeros at init;
    # use small random values here so the attention path is exercised).
    scale = 1.0 / np.sqrt(F)
    w_t = jax.random.uniform(kw, (F, F), minval=-scale, maxval=scale,
                             dtype=jnp.float32)                     # W^T
    b_w = jax.random.uniform(kbw, (1, F), minval=-scale, maxval=scale,
                             dtype=jnp.float32)
    a_mat = 0.1 * jax.random.normal(ka, (F, F), dtype=jnp.float32)
    gscale = 1.0 / np.sqrt(2 * F)
    w_g = jax.random.uniform(kwg, (2 * F, 1), minval=-gscale, maxval=gscale,
                             dtype=jnp.float32)                     # gate W^T
    b_g = jax.random.uniform(kbg, (1, 1), minval=-gscale, maxval=gscale,
                             dtype=jnp.float32)

    # 0/1 adjacency is exact in bf16 and halves the dominant DMA stream.
    out = gat_gate(x, adj.astype(jnp.bfloat16), w_t, b_w, a_mat, w_g, b_g)
    out = jax.block_until_ready(out)

    ref = _reference(x, adj, w_t, b_w, a_mat, w_g, b_g)
    np.testing.assert_allclose(np.asarray(out), np.asarray(ref),
                               rtol=1e-4, atol=1e-4)
    print("KERNEL_OK")
</pallas_src>

<mosaic_0001>
module attributes {stable_mosaic.version = 11 : i64} {
  func.func @_gat_gate_kernel(%arg0: i32, %arg1: memref<2x16x128xf32, #tpu.memory_space<vmem>>, %arg2: memref<2x16x16xbf16, #tpu.memory_space<vmem>>, %arg3: memref<128x128xf32, #tpu.memory_space<vmem>>, %arg4: memref<1x128xf32, #tpu.memory_space<vmem>>, %arg5: memref<128x128xf32, #tpu.memory_space<vmem>>, %arg6: memref<1x128xf32, #tpu.memory_space<vmem>>, %arg7: memref<1x128xf32, #tpu.memory_space<vmem>>, %arg8: memref<1x128xf32, #tpu.memory_space<vmem>>, %arg9: memref<1x1xf32, #tpu.memory_space<smem>>, %arg10: memref<2x16x128xf32, #tpu.memory_space<vmem>>) attributes {dimension_semantics = [#tpu.dimension_semantics<parallel>], iteration_bounds = array<i64: 2>, scalar_prefetch = 0 : i64, scratch_operands = 0 : i64, tpu.core_type = #tpu.core_type<tc>, window_params = [{transform_indices = @transform_0, window_bounds = array<i64: 2, 16, 128>}, {transform_indices = @transform_1, window_bounds = array<i64: 2, 16, 16>}, {pipeline_mode = #tpu.pipeline_mode<synchronous>, transform_indices = @transform_2, window_bounds = array<i64: 128, 128>}, {pipeline_mode = #tpu.pipeline_mode<synchronous>, transform_indices = @transform_3, window_bounds = array<i64: 1, 128>}, {pipeline_mode = #tpu.pipeline_mode<synchronous>, transform_indices = @transform_4, window_bounds = array<i64: 128, 128>}, {pipeline_mode = #tpu.pipeline_mode<synchronous>, transform_indices = @transform_5, window_bounds = array<i64: 1, 128>}, {pipeline_mode = #tpu.pipeline_mode<synchronous>, transform_indices = @transform_6, window_bounds = array<i64: 1, 128>}, {pipeline_mode = #tpu.pipeline_mode<synchronous>, transform_indices = @transform_7, window_bounds = array<i64: 1, 128>}, {transform_indices = @transform_8, window_bounds = array<i64: 1, 1>}, {transform_indices = @transform_9, window_bounds = array<i64: 2, 16, 128>}]} {
    %c0 = arith.constant 0 : index
    %c0_0 = arith.constant 0 : index
    %c0_1 = arith.constant 0 : index
    %0 = vector.load %arg1[%c0, %c0_0, %c0_1] : memref<2x16x128xf32, #tpu.memory_space<vmem>>, vector<2x16x128xf32>
    %c0_2 = arith.constant 0 : index
    %c0_3 = arith.constant 0 : index
    %c0_4 = arith.constant 0 : index
    %1 = vector.load %arg2[%c0_2, %c0_3, %c0_4] : memref<2x16x16xbf16, #tpu.memory_space<vmem>>, vector<2x16x16xbf16>
    %2 = arith.extf %1 : vector<2x16x16xbf16> to vector<2x16x16xf32>
    %3 = vector.shape_cast %0 : vector<2x16x128xf32> to vector<32x128xf32>
    %c0_5 = arith.constant 0 : index
    %c0_6 = arith.constant 0 : index
    %4 = vector.load %arg3[%c0_5, %c0_6] : memref<128x128xf32, #tpu.memory_space<vmem>>, vector<128x128xf32>
    %cst = arith.constant dense<0.000000e+00> : vector<32x128xf32>
    %5 = tpu.matmul %3, %4, %cst {dimension_numbers = #tpu.dot_dimension_numbers<[1], [0], [0], [1], [0, 0, 1, 1], [], []>} : vector<32x128xf32>, vector<128x128xf32>, vector<32x128xf32> -> vector<32x128xf32>
    %c0_7 = arith.constant 0 : index
    %c0_8 = arith.constant 0 : index
    %6 = vector.load %arg4[%c0_7, %c0_8] : memref<1x128xf32, #tpu.memory_space<vmem>>, vector<1x128xf32>
    %7 = vector.broadcast %6 : vector<1x128xf32> to vector<32x128xf32>
    %8 = arith.addf %5, %7 : vector<32x128xf32>
    %c0_9 = arith.constant 0 : index
    %c0_10 = arith.constant 0 : index
    %9 = vector.load %arg5[%c0_9, %c0_10] : memref<128x128xf32, #tpu.memory_space<vmem>>, vector<128x128xf32>
    %cst_11 = arith.constant dense<0.000000e+00> : vector<32x128xf32>
    %10 = tpu.matmul %3, %9, %cst_11 {dimension_numbers = #tpu.dot_dimension_numbers<[1], [0], [0], [1], [0, 0, 1, 1], [], []>} : vector<32x128xf32>, vector<128x128xf32>, vector<32x128xf32> -> vector<32x128xf32>
    %c0_12 = arith.constant 0 : index
    %c0_13 = arith.constant 0 : index
    %11 = vector.load %arg6[%c0_12, %c0_13] : memref<1x128xf32, #tpu.memory_space<vmem>>, vector<1x128xf32>
    %12 = vector.broadcast %11 : vector<1x128xf32> to vector<32x128xf32>
    %13 = arith.addf %10, %12 : vector<32x128xf32>
    %14 = vector.shape_cast %8 : vector<32x128xf32> to vector<2x16x128xf32>
    %15 = vector.shape_cast %13 : vector<32x128xf32> to vector<2x16x128xf32>
    "tpu.trace_start"() <{level = 10 : i32, message = "bjl,bkl->bjk"}> : () -> ()
    %cst_14 = arith.constant dense<0.000000e+00> : vector<2x16x16xf32>
    %16 = tpu.matmul %15, %14, %cst_14 {dimension_numbers = #tpu.dot_dimension_numbers<[2], [2], [1], [1], [0, 0, 0, 1, 1, 1], [0], [0]>} : vector<2x16x128xf32>, vector<2x16x128xf32>, vector<2x16x16xf32> -> vector<2x16x16xf32>
    %cst_15 = arith.constant 0.000000e+00 : f32
    "tpu.trace_stop"() : () -> ()
    %17 = vector.broadcast %cst_15 : f32 to vector<2x16x16xf32>
    %18 = arith.cmpf ogt, %2, %17 : vector<2x16x16xf32>
    %cst_16 = arith.constant -9.000000e+15 : f32
    %19 = vector.broadcast %cst_16 : f32 to vector<2x16x16xf32>
    %20 = arith.select %18, %16, %19 : vector<2x16x16xi1>, vector<2x16x16xf32>
    %cst_17 = arith.constant dense<0xFF800000> : vector<2x16xf32>
    %21 = vector.multi_reduction <maximumf>, %20, %cst_17 [1] : vector<2x16x16xf32> to vector<2x16xf32>
    %22 = vector.shape_cast %21 : vector<2x16xf32> to vector<2x1x16xf32>
    %23 = vector.broadcast %22 : vector<2x1x16xf32> to vector<2x16x16xf32>
    %24 = arith.subf %20, %23 : vector<2x16x16xf32>
    %25 = math.exp %24 : vector<2x16x16xf32>
    %cst_18 = arith.constant dense<0.000000e+00> : vector<2x16xf32>
    %26 = vector.multi_reduction <add>, %25, %cst_18 [1] : vector<2x16x16xf32> to vector<2x16xf32>
    %27 = vector.shape_cast %26 : vector<2x16xf32> to vector<2x1x16xf32>
    %28 = tpu.reciprocal %27 {approx = true} : vector<2x1x16xf32> -> vector<2x1x16xf32>
    %29 = arith.mulf %27, %28 : vector<2x1x16xf32>
    %cst_19 = arith.constant 2.000000e+00 : f32
    %30 = vector.broadcast %cst_19 : f32 to vector<2x1x16xf32>
    %31 = arith.subf %30, %29 : vector<2x1x16xf32>
    %32 = arith.mulf %28, %31 : vector<2x1x16xf32>
    %33 = vector.broadcast %32 : vector<2x1x16xf32> to vector<2x16x16xf32>
    %34 = arith.mulf %25, %33 : vector<2x16x16xf32>
    %35 = arith.mulf %34, %2 : vector<2x16x16xf32>
    "tpu.trace_start"() <{level = 10 : i32, message = "bjk,bkl->bjl"}> : () -> ()
    %cst_20 = arith.constant dense<0.000000e+00> : vector<2x16x128xf32>
    %36 = tpu.matmul %35, %14, %cst_20 {dimension_numbers = #tpu.dot_dimension_numbers<[2], [1], [1], [2], [0, 0, 0, 1, 1, 2], [0], [0]>} : vector<2x16x16xf32>, vector<2x16x128xf32>, vector<2x16x128xf32> -> vector<2x16x128xf32>
    "tpu.trace_stop"() : () -> ()
    %cst_21 = arith.constant 0.000000e+00 : f32
    %37 = vector.broadcast %cst_21 : f32 to vector<2x16x128xf32>
    %38 = arith.maximumf %36, %37 : vector<2x16x128xf32>
    %c0_22 = arith.constant 0 : index
    %c0_23 = arith.constant 0 : index
    %39 = vector.load %arg7[%c0_22, %c0_23] : memref<1x128xf32, #tpu.memory_space<vmem>>, vector<1x128xf32>
    %40 = vector.shape_cast %39 : vector<1x128xf32> to vector<1x1x128xf32>
    %41 = vector.broadcast %40 : vector<1x1x128xf32> to vector<2x16x128xf32>
    %42 = arith.mulf %0, %41 : vector<2x16x128xf32>
    %c0_24 = arith.constant 0 : index
    %c0_25 = arith.constant 0 : index
    %43 = vector.load %arg8[%c0_24, %c0_25] : memref<1x128xf32, #tpu.memory_space<vmem>>, vector<1x128xf32>
    %44 = vector.shape_cast %43 : vector<1x128xf32> to vector<1x1x128xf32>
    %45 = vector.broadcast %44 : vector<1x1x128xf32> to vector<2x16x128xf32>
    %46 = arith.mulf %38, %45 : vector<2x16x128xf32>
    %47 = arith.addf %42, %46 : vector<2x16x128xf32>
    %cst_26 = arith.constant dense<0.000000e+00> : vector<2x16xf32>
    %48 = vector.multi_reduction <add>, %47, %cst_26 [2] : vector<2x16x128xf32> to vector<2x16xf32>
    %49 = vector.shape_cast %48 : vector<2x16xf32> to vector<2x16x1xf32>
    %c0_27 = arith.constant 0 : index
    %c0_28 = arith.constant 0 : index
    %50 = memref.load %arg9[%c0_27, %c0_28] : memref<1x1xf32, #tpu.memory_space<smem>>
    %51 = vector.broadcast %50 : f32 to vector<2x16x1xf32>
    %52 = arith.addf %49, %51 : vector<2x16x1xf32>
    %53 = arith.negf %52 : vector<2x16x1xf32>
    %54 = math.exp %53 : vector<2x16x1xf32>
    %cst_29 = arith.constant 1.000000e+00 : f32
    %55 = vector.broadcast %cst_29 : f32 to vector<2x16x1xf32>
    %56 = arith.addf %55, %54 : vector<2x16x1xf32>
    %57 = arith.divf %55, %56 : vector<2x16x1xf32>
    %58 = vector.broadcast %57 : vector<2x16x1xf32> to vector<2x16x128xf32>
    %59 = arith.mulf %58, %0 : vector<2x16x128xf32>
    %cst_30 = arith.constant 1.000000e+00 : f32
    %60 = vector.broadcast %cst_30 : f32 to vector<2x16x1xf32>
    %61 = arith.subf %60, %57 : vector<2x16x1xf32>
    %62 = vector.broadcast %61 : vector<2x16x1xf32> to vector<2x16x128xf32>
    %63 = arith.mulf %62, %38 : vector<2x16x128xf32>
    %64 = arith.addf %59, %63 : vector<2x16x128xf32>
    %c0_31 = arith.constant 0 : index
    %c0_32 = arith.constant 0 : index
    %c0_33 = arith.constant 0 : index
    %65 = vector.load %arg10[%c0_31, %c0_32, %c0_33] : memref<2x16x128xf32, #tpu.memory_space<vmem>>, vector<2x16x128xf32>
    tpu.vector_store %arg10[%c0_31, %c0_32, %c0_33], %64 {strides = array<i32>} : memref<2x16x128xf32, #tpu.memory_space<vmem>>, vector<2x16x128xf32>,
    return
  }
  func.func @transform_0(%arg0: i32) -> (i32, i32, i32) {
    %c0_i32 = arith.constant 0 : i32
    %c0_i32_0 = arith.constant 0 : i32
    %c0_i32_1 = arith.constant 0 : i32
    return %arg0, %c0_i32, %c0_i32_0 : i32, i32, i32
  }
  func.func @transform_1(%arg0: i32) -> (i32, i32, i32) {
    %c0_i32 = arith.constant 0 : i32
    %c0_i32_0 = arith.constant 0 : i32
    %c0_i32_1 = arith.constant 0 : i32
    return %arg0, %c0_i32, %c0_i32_0 : i32, i32, i32
  }
  func.func @transform_2(%arg0: i32) -> (i32, i32) {
    %c0_i32 = arith.constant 0 : i32
    %c0_i32_0 = arith.constant 0 : i32
    %c0_i32_1 = arith.constant 0 : i32
    return %c0_i32, %c0_i32_0 : i32, i32
  }
  func.func @transform_3(%arg0: i32) -> (i32, i32) {
    %c0_i32 = arith.constant 0 : i32
    %c0_i32_0 = arith.constant 0 : i32
    %c0_i32_1 = arith.constant 0 : i32
    return %c0_i32, %c0_i32_0 : i32, i32
  }
  func.func @transform_4(%arg0: i32) -> (i32, i32) {
    %c0_i32 = arith.constant 0 : i32
    %c0_i32_0 = arith.constant 0 : i32
    %c0_i32_1 = arith.constant 0 : i32
    return %c0_i32, %c0_i32_0 : i32, i32
  }
  func.func @transform_5(%arg0: i32) -> (i32, i32) {
    %c0_i32 = arith.constant 0 : i32
    %c0_i32_0 = arith.constant 0 : i32
    %c0_i32_1 = arith.constant 0 : i32
    return %c0_i32, %c0_i32_0 : i32, i32
  }
  func.func @transform_6(%arg0: i32) -> (i32, i32) {
    %c0_i32 = arith.constant 0 : i32
    %c0_i32_0 = arith.constant 0 : i32
    %c0_i32_1 = arith.constant 0 : i32
    return %c0_i32, %c0_i32_0 : i32, i32
  }
  func.func @transform_7(%arg0: i32) -> (i32, i32) {
    %c0_i32 = arith.constant 0 : i32
    %c0_i32_0 = arith.constant 0 : i32
    %c0_i32_1 = arith.constant 0 : i32
    return %c0_i32, %c0_i32_0 : i32, i32
  }
  func.func @transform_8(%arg0: i32) -> (i32, i32) {
    %c0_i32 = arith.constant 0 : i32
    %c0_i32_0 = arith.constant 0 : i32
    %c0_i32_1 = arith.constant 0 : i32
    return %c0_i32, %c0_i32_0 : i32, i32
  }
  func.func @transform_9(%arg0: i32) -> (i32, i32, i32) {
    %c0_i32 = arith.constant 0 : i32
    %c0_i32_0 = arith.constant 0 : i32
    %c0_i32_1 = arith.constant 0 : i32
    return %arg0, %c0_i32, %c0_i32_0 : i32, i32, i32
  }
}

</mosaic_0001>

<bundles_post_ra>
// kernel: tpu_custom_call.1
= control target key start
LH: loop header
LB: loop body
LE: loop exit
PB: predicated region body
PF: predicated region fallthrough
CT: control target
= control target key end

     0   :  { %s2180_s0 = inlined_call_operand.hbm [shape: f32[4,16,128], index: 0, kind: input, shape index: {}]   ;;  %s2181_s1 = inlined_call_operand.hbm [shape: bf16[4,16,16], index: 1, kind: input, shape index: {}]   ;;  %s2182_s2 = inlined_call_operand.hbm [shape: f32[128,128], index: 2, kind: input, shape index: {}]   ;;  %s2183_s3 = inlined_call_operand.vmem [shape: f32[1,128], index: 3, kind: input, shape index: {}]   ;;  %s2184_s4 = inlined_call_operand.hbm [shape: f32[128,128], index: 4, kind: input, shape index: {}]   ;;  %s2185_s5 = inlined_call_operand.vmem [shape: f32[1,128], index: 5, kind: input, shape index: {}]   ;;  %s2186_s6 = inlined_call_operand.vmem [shape: f32[1,128], index: 6, kind: input, shape index: {}]   ;;  %s2187_s7 = inlined_call_operand.vmem [shape: f32[1,128], index: 7, kind: input, shape index: {}]   ;;  %s2188_s8 = inlined_call_operand.<no memory space> [shape: f32[1,1], index: 8, kind: input, shape index: {}]   ;;  %s2189_s9 = inlined_call_operand.hbm [shape: f32[4,16,128], index: 9, kind: output, shape index: {}]  }
   0x1   :  { %2198 = sst [smem:[#allocation20_spill]] %s2180_s0 }
   0x2   :  { %2199 = sst [smem:[#allocation21_spill]] %s2182_s2 }
   0x3   :  { %2200 = sst [smem:[#allocation22_spill]] %s2184_s4 }
   0x4   :  { %14 = sst [smem:[#allocation2]] %s2188_s8 }
   0x5   :  { %15 = vsyncpa [#allocation4], 0 }
   0x6   :  { %17 = vsyncpa [#allocation4 + $0x1], 0 }
   0x7   :  { %18 = vsyncpa [#allocation7], 0 }
   0x8   :  { %20 = vsyncpa [#allocation7 + $0x1], 0 }
   0x9   :  { %21 = vsyncpa [#allocation10], 0 }
   0xa   :  { %22 = vsyncpa [#allocation5], 0 }
   0xb   :  { %24 = vsyncpa [#allocation5 + $0x1], 0  ;;  %s1825_s11 = smov 0   ;;  %s1827_s12 = smov 0  }
   0xc   :  { %s1829_s13 = smov 0   ;;  %s1831_s14 = smov 0  }
   0xd LB: > { %2201 = sst [smem:[#allocation17_spill]] %s1755_s13  ;;  %s1846_s8 = sadd.s32 4294967295, %s1759_s14   ;;  %s1759_s14 = sphi %s1831_s14, %s2225_s14   ;;  %s1755_s13 = sphi %s1829_s13, %s2227_s13   ;;  %s1751_s12 = sphi %s1827_s12, %s2229_s12   ;;  %s1747_s11 = sphi %s1825_s11, %s2228_s11  }
   0xe   : > { %s1257_s15 = sadd.s32 4294967294, %s1759_s14   ;;  %p50_p0 = scmp.ne.s32.totalorder %s1751_s12, %s1747_s11 }
   0xf   : > { %p2192_p1 = scmp.eq.s32.totalorder %s1846_s8, 0  ;;  %p247_p2 = scmp.eq.s32.totalorder %s1846_s8, 1 }
  0x10   : > { %p253_p3 = scmp.eq.s32.totalorder %s1257_s15, 1  ;;  %p1258_p5 = scmp.ge.s32.totalorder %s1759_s14, 1 }
  0x11   : > { %p1855_p4 = por %p2192_p1, %p50_p0  ;;  %p260_p7 = scmp.lt.s32.totalorder %s1759_s14, 3 }
  0x12   : > { %p1860_p6 = por %p253_p3, %p50_p0  ;;  %s1761_s19 = smov [#allocation8]  }
  0x13   : > { %s2202_s16 = scalar_select %p1855_p4, 1, 0 }
  0x14   : > { %s2203_s17 = scalar_select %p1860_p6, 1, 0 }
  0x15   : > { %p1865_p8 = pnand %p1258_p5, %p260_p7  ;;  %s272_s20 = sshll.u32 %s1761_s19, 4  ;;  %s273_s20 = int_to_ptr.vmem [resolvable:$true] %s272_s20 }
  0x16   : > { %s1762_s22 = smov [#allocation9]   ;;  %s1586_s24 = scalar_lea.vmem %s273_s20, 2048 }
  0x17   : > { %p1483_p9 = pneg %p1865_p8  ;;  %s288_s23 = sshll.u32 %s1762_s22, 4  ;;  %s289_s23 = int_to_ptr.vmem [resolvable:$true] %s288_s23 }
  0x18   : > { %p1587_p13 = scmp.ne.s32.totalorder %s273_s20, %s1586_s24  ;;  %p1594_p5 = scmp.lt.s32.totalorder %s273_s20, %s273_s20 }
  0x19   : > { %p1874_p11 = pnand %p1483_p9, %p2192_p1  ;;  %p1595_p7 = scmp.lt.s32.totalorder %s1586_s24, %s1586_s24 }
  0x1b   : > { %p1577_p12 = pneg %p1874_p11  ;;  %p1596_p10 = por %p1595_p7, %p1594_p5 }
  0x1d   : > { %p1589_p0 = pnand %p1587_p13, %p1577_p12 }
  0x1f   : > { %p1590_p3 = pneg %p1589_p0 }
  0x21   : > { %p1597_p9 = pnand %p1596_p10, %p1590_p3 }
  0x23   : > { %1600 = shalt.err (!%p1597_p9)
}
  0x24   : > { %s2190_s25 = smov 128   ;;  %s2191_s26 = smov 8  }
  0x25   : > { %s2206_s2 = sld [smem:[#allocation21_spill]]  ;;  %s1612_s29 = scalar_lea.vmem %s289_s23, 2048 }
  0x26   : > { %p1613_p13 = scmp.ne.s32.totalorder %s289_s23, %s1612_s29  ;;  %p1620_p10 = scmp.lt.s32.totalorder %s289_s23, %s289_s23 }
  0x27   : > { %p1621_p3 = scmp.lt.s32.totalorder %s1612_s29, %s1612_s29 }
  0x28   : > { %p1615_p0 = pnand %p1613_p13, %p1577_p12 }
  0x29   : > { %p1622_p7 = por %p1621_p3, %p1620_p10 }
  0x2a   : > { %p1616_p5 = pneg %p1615_p0 }
  0x2b   : > { %1486 = dma.hbm_to_vmem [thread:$0]  (!%p1874_p11), %s2206_s2, 2048, %s273_s20, [#allocation7], %s2190_s25, %s2190_s25, %s2191_s26  }
  0x2c   : > { %p1623_p9 = pnand %p1622_p7, %p1616_p5 }
  0x2e   : > { %1626 = shalt.err (!%p1623_p9)
}
  0x2f   : > { %s2207_s4 = sld [smem:[#allocation22_spill]]  ;;  %s1903_s15 = sadd.s32 1, %s1759_s14  }
  0x30   : > { %2208 = sst [smem:[#allocation18_spill]] %s1903_s15  ;;  %s37_s19 = sadd.s32 1, %s1755_s13 }
  0x31   : > { %s34_s20 = ssub.s32 %s1759_s14, %s1903_s15  ;;  %p44_p12 = scmp.ne.s32.totalorder %s1755_s13, %s1751_s12 }
  0x32   : > { %p35_p13 = scmp.eq.s32.totalorder %s34_s20, 0  ;;  %p45_p0 = scmp.eq.s32.totalorder %s1759_s14, 0 }
  0x33   : > { %p1913_p5 = por %p247_p2, %p44_p12  ;;  %p1503_p10 = scmp.lt.s32.totalorder %s1759_s14, 2 }
  0x34   : > { %s1919_s22 = scalar_select %p35_p13, %s1755_s13, %s37_s19  }
  0x35   : > { %1489 = dma.hbm_to_vmem [thread:$0]  (!%p1874_p11), %s2207_s4, 2048, %s289_s23, [#allocation10], %s2190_s25, %s2190_s25, %s2191_s26  }
  0x36   : > { %s2209_s21 = scalar_select %p1913_p5, 1, 0 }
  0x37   : > { %2210 = sst [smem:[#allocation19_spill]] %s1919_s22  ;;  %p46_p3 = por %p45_p0, %p44_p12 }
  0x38   : > { %s1922_s24 = sand.u32 1, %s1755_s13   ;;  %s1295_s27 = sshll.u32 %s1759_s14, 9 }
  0x39   : > { %s1262_s23 = sshll.u32 %s1922_s24, 5  ;;  %s2211_s0 = sld [smem:[#allocation20_spill]] }
  0x3a   : > { %s318_s10 = scalar_lea.vmem [#allocation3], %s1262_s23  ;;  %p1933_p2 = pnand %p1503_p10, %p46_p3 }
  0x3b   : > { %s326_s20 = sshll.u32 %s318_s10, 4  ;;  %s315_s2 = scalar_lea.sflag [#allocation4], %s1922_s24  ;;  %s1931_s20 = int_to_ptr.vmem [resolvable:$true] %s326_s20 }
  0x3c   : > { %p1629_p7 = pneg %p1933_p2 }
  0x3f   : > { %s1929_s30 = scalar_lea.hbm %s2211_s0, %s1295_s27  ;;  %s1632_s28 = scalar_lea.hbm %s2211_s0, 1024 }
  0x40   : > { %s1627_s4 = scalar_lea.hbm %s1929_s30, 512  ;;  %p1633_p13 = scmp.lt.s32.totalorder %s1929_s30, %s2211_s0 }
  0x41   : > { %p1628_p11 = scmp.ne.s32.totalorder %s1929_s30, %s1627_s4  ;;  %p1634_p0 = scmp.lt.s32.totalorder %s1632_s28, %s1627_s4 }
  0x43   : > { %p1630_p9 = pnand %p1629_p7, %p1628_p11  ;;  %p1635_p10 = por %p1634_p0, %p1633_p13 }
  0x45   : > { %p1631_p12 = pneg %p1630_p9 }
  0x47   : > { %p1636_p3 = pnand %p1635_p10, %p1631_p12 }
  0x49   : > { %1639 = shalt.err (!%p1636_p3)
}
  0x4a   : > { %s1640_s25 = scalar_lea.vmem %s1931_s20, 512  ;;  %s1765_s23 = smov [#allocation3]  }
  0x4b   : > { %p1641_p1 = scmp.ne.s32.totalorder %s1931_s20, %s1640_s25  ;;  %s1645_s27 = sshll.u32 %s1765_s23, 4  ;;  %s1646_s27 = int_to_ptr.vmem [resolvable:$false] %s1645_s27 }
  0x4c   : > { %s1647_s26 = scalar_lea.vmem %s1646_s27, 1024  ;;  %p1648_p6 = scmp.lt.s32.totalorder %s1931_s20, %s1646_s27 }
  0x4d   : > { %p1643_p11 = pnand %p1641_p1, %p1629_p7  ;;  %p1649_p5 = scmp.lt.s32.totalorder %s1647_s26, %s1640_s25 }
  0x4f   : > { %p1644_p9 = pneg %p1643_p11  ;;  %p1650_p4 = por %p1649_p5, %p1648_p6 }
  0x51   : > { %p1651_p13 = pnand %p1650_p4, %p1644_p9 }
  0x53   : > { %1654 = shalt.err (!%p1651_p13)
}
  0x54   : > { %s2213_s4 = smov 8   ;;  %s2214_s28 = smov 128  }
  0x55   : > { %1493 = dma.hbm_to_vmem [thread:$0]  (!%p1933_p2), %s1929_s30, 512, %s1931_s20, %s315_s2, %s2214_s28, %s2214_s28, %s2213_s4  }
  0x56   : > { %s1297_s29 = sshll.u32 %s1759_s14, 8  ;;  %s2215_s23 = sshll.u32 %s1922_s24, 4 }
  0x57   : > { %s1973_s26 = scalar_lea.hbm %s2181_s1, %s1297_s29  ;;  %s340_s27 = scalar_lea.vmem [#allocation6], %s2215_s23 }
  0x58   : > { %s348_s0 = sshll.u32 %s340_s27, 4  ;;  %s2216_s22 = sand.u32 1, %s1759_s14   ;;  %s1977_s0 = int_to_ptr.vmem [resolvable:$true] %s348_s0 }
  0x59   : > { %s1981_s13 = scalar_lea.sflag [#allocation7], %s2216_s22  ;;  %s1655_s15 = scalar_lea.hbm %s1973_s26, 256 }
  0x5a   : > { %p1656_p1 = scmp.ne.s32.totalorder %s1973_s26, %s1655_s15  ;;  %s1660_s24 = scalar_lea.hbm %s2181_s1, 512 }
  0x5b   : > { %p1661_p5 = scmp.lt.s32.totalorder %s1973_s26, %s2181_s1  ;;  %p1662_p12 = scmp.lt.s32.totalorder %s1660_s24, %s1655_s15 }
  0x5c   : > { %p1658_p4 = pnand %p1656_p1, %p1629_p7 }
  0x5d   : > { %p1663_p0 = por %p1662_p12, %p1661_p5 }
  0x5e   : > { %p1659_p6 = pneg %p1658_p4 }
  0x60   : > { %p1664_p10 = pnand %p1663_p0, %p1659_p6 }
  0x62   : > { %1667 = shalt.err (!%p1664_p10)
}
  0x63   : > { %s1668_s22 = scalar_lea.vmem %s1977_s0, 256  ;;  %s1766_s28 = smov [#allocation6]  }
  0x64   : > { %p1669_p3 = scmp.ne.s32.totalorder %s1977_s0, %s1668_s22  ;;  %s1673_s29 = sshll.u32 %s1766_s28, 4  ;;  %s1674_s29 = int_to_ptr.vmem [resolvable:$false] %s1673_s29 }
  0x65   : > { %s1675_s10 = scalar_lea.vmem %s1674_s29, 512  ;;  %p1676_p13 = scmp.lt.s32.totalorder %s1977_s0, %s1674_s29 }
  0x66   : > { %p1671_p11 = pnand %p1669_p3, %p1629_p7  ;;  %p1677_p1 = scmp.lt.s32.totalorder %s1675_s10, %s1668_s22 }
  0x68   : > { %p1672_p9 = pneg %p1671_p11  ;;  %p1678_p4 = por %p1677_p1, %p1676_p13 }
  0x6a   : > { %p1679_p5 = pnand %p1678_p4, %p1672_p9 }
  0x6c   : > { %1682 = shalt.err (!%p1679_p5)
}
  0x6d   : > { %s1767_s15 = smov 64   ;;  %s1768_s25 = smov 4  }
  0x6e   : > { %1496 = dma.hbm_to_vmem [thread:$0]  (!%p1933_p2), %s1973_s26, 256, %s1977_s0, %s1981_s13, %s1767_s15, %s1767_s15, %s1768_s25  }
  0x6f   : > { %360 = sbr.rel (%p1865_p8) target bundleno = 1034 (0x40a), region = 56  ;;  %s2009_s23 = sand.u32 (!%p1865_p8), 1, %s1751_s12  }
  0x70   : > { %s1271_s27 = sshll.u32 (!%p1865_p8), %s2009_s23, 5  ;;  %s363_s2 = scalar_lea.sflag (!%p1865_p8), [#allocation4], %s2009_s23 }
  0x71   : > { %s2015_s30 = scalar_lea.vmem (!%p1865_p8), [#allocation3], %s1271_s27  ;;  %p2217_p7 = scmp.ne.s32.totalorder (!%p1865_p8), %s2202_s16, 0 }
  0x74   : > { %1726 = dma.done.wait (%p2217_p7), %s363_s2, 512  }
  0x75   : > { %1728 = vsyncadd (%p2217_p7), %s363_s2, 4294966784  ;;  %s371_s0 = sand.u32 1, %s1846_s8   ;;  %s1272_s13 = sshll.u32 %s2009_s23, 4 }
  0x76   : > { %s372_s18 = scalar_lea.sflag [#allocation7], %s371_s0  ;;  %s2023_s19 = scalar_lea.vmem [#allocation6], %s1272_s13 }
  0x77   : > { %1730 = dma.done.wait (%p2217_p7), %s372_s18, 256  }
  0x78   : > { %1732 = vsyncadd (%p2217_p7), %s372_s18, 4294967040  ;;  %p2218_p8 = scmp.eq.s32.totalorder %s1846_s8, 0 }
  0x7a   : > { %1734 = dma.done.wait (%p2218_p8), [#allocation7], 2048   ;;  %p2219_p2 = pmov %p2218_p8 }
  0x7c   : > { %1736 = vsyncadd (%p2219_p2), [#allocation7], 4294965248  ;;  %p2220_p6 = pmov %p2219_p2 }
  0x7d   : > { %p2221_p12 = pmov %p2219_p2 }
  0x7e   : > { %1738 = dma.done.wait (%p2220_p6), [#allocation10], 2048  }
  0x7f   : > { %1740 = vsyncadd (%p2221_p12), [#allocation10], 4294965248  ;;  %v453_v0 = vld [vmem:[#allocation8 + $0x78] sm:$0xff]  ;;  %v452_v1 = vld [vmem:[#allocation8 + $0x70] sm:$0xff]  ;;  %vm812_vm2 = vcmask 130048   ;;  %s1077_s10 = sld [smem:[#allocation2]] }
  0x80   : > { %1365 = vmatprep.subr.mxu0 %v453_v0  ;;  %v561_v2 = vld [vmem:[#allocation9 + $0x78] sm:$0xff]  ;;  %v560_v3 = vld [vmem:[#allocation9 + $0x70] sm:$0xff]  ;;  %v451_v4 = vld [vmem:[#allocation8 + $0x68] sm:$0xff]  ;;  %s422_s15 = scalar_lea.vmem [#allocation11], %s1271_s27  ;;  %s1299_s25 = sshll.u32 %s1846_s8, 9 }
  0x81   : > { %1366 = vmatpush3.msra.mxu0 %v453_v0  ;;  %1403 = vmatprep.subr.mxu1 %v561_v2  ;;  %v559_v5 = vld [vmem:[#allocation9 + $0x68] sm:$0xff]  ;;  %v450_v6 = vld [vmem:[#allocation8 + $0x60] sm:$0xff]  ;;  %v449_v8 = vld [vmem:[#allocation8 + $0x58] sm:$0xff]  ;;  %s1142_s2 = sshll.u32 %s422_s15, 4  ;;  %s2135_s0 = scalar_lea.hbm %s2189_s9, %s1299_s25  ;;  %s2137_s2 = int_to_ptr.vmem [resolvable:$true] %s1142_s2 }
  0x82   : > { %1367 = vmatprep.subr.mxu0 %v452_v1  ;;  %1404 = vmatpush3.msra.mxu1 %v561_v2  ;;  %v558_v7 = vld [vmem:[#allocation9 + $0x60] sm:$0xff]  ;;  %v557_v9 = vld [vmem:[#allocation9 + $0x58] sm:$0xff]  ;;  %v448_v10 = vld [vmem:[#allocation8 + $0x50] sm:$0xff]  ;;  %s1128_s8 = scalar_lea.sflag [#allocation5], %s2009_s23  ;;  %s1683_s13 = scalar_lea.vmem %s2137_s2, 512 }
  0x83   : > { %1368 = vmatpush3.msra.mxu0 %v452_v1  ;;  %1405 = vmatprep.subr.mxu1 %v560_v3  ;;  %v556_v11 = vld [vmem:[#allocation9 + $0x50] sm:$0xff]  ;;  %v447_v12 = vld [vmem:[#allocation8 + $0x48] sm:$0xff]  ;;  %v446_v14 = vld [vmem:[#allocation8 + $0x40] sm:$0xff]  ;;  %p1684_p0 = scmp.ne.s32.totalorder %s2137_s2, %s1683_s13  ;;  %p2222_p10 = scmp.ne.s32.totalorder %s2209_s21, 0 }
  0x84   : > { %1369 = vmatprep.subr.mxu0 %v451_v4  ;;  %1406 = vmatpush3.msra.mxu1 %v560_v3  ;;  %v555_v13 = vld [vmem:[#allocation9 + $0x48] sm:$0xff]  ;;  %v554_v15 = vld [vmem:[#allocation9 + $0x40] sm:$0xff]  ;;  %v445_v16 = vld [vmem:[#allocation8 + $0x38] sm:$0xff]  ;;  %s1769_s18 = smov [#allocation11]  }
  0x85   : > { %1370 = vmatpush3.msra.mxu0 %v451_v4  ;;  %1407 = vmatprep.subr.mxu1 %v559_v5  ;;  %v553_v17 = vld [vmem:[#allocation9 + $0x38] sm:$0xff]  ;;  %v444_v18 = vld [vmem:[#allocation8 + $0x30] sm:$0xff]  ;;  %v443_v20 = vld [vmem:[#allocation8 + $0x28] sm:$0xff]  ;;  %p1685_p3 = pnand %p1684_p0, %p2222_p10 }
  0x86   : > { %1371 = vmatprep.subr.mxu0 %v450_v6  ;;  %1408 = vmatpush3.msra.mxu1 %v559_v5  ;;  %v552_v19 = vld [vmem:[#allocation9 + $0x30] sm:$0xff]  ;;  %v551_v21 = vld [vmem:[#allocation9 + $0x28] sm:$0xff]  ;;  %v442_v22 = vld [vmem:[#allocation8 + $0x20] sm:$0xff] }
  0x87   : > { %1372 = vmatpush3.msra.mxu0 %v450_v6  ;;  %1409 = vmatprep.subr.mxu1 %v558_v7  ;;  %v550_v23 = vld [vmem:[#allocation9 + $0x20] sm:$0xff]  ;;  %v441_v24 = vld [vmem:[#allocation8 + $0x18] sm:$0xff]  ;;  %v440_v26 = vld [vmem:[#allocation8 + $0x10] sm:$0xff]  ;;  %p1686_p11 = pneg %p1685_p3 }
  0x88   : > { %1373 = vmatprep.subr.mxu0 %v449_v8  ;;  %1410 = vmatpush3.msra.mxu1 %v558_v7  ;;  %v549_v25 = vld [vmem:[#allocation9 + $0x18] sm:$0xff]  ;;  %v548_v27 = vld [vmem:[#allocation9 + $0x10] sm:$0xff]  ;;  %v439_v28 = vld [vmem:[#allocation8 + $0x8] sm:$0xff] }
  0x89   : > { %1374 = vmatpush3.msra.mxu0 %v449_v8  ;;  %1411 = vmatprep.subr.mxu1 %v557_v9  ;;  %v2038_v29 = vld [vmem:[%s2015_s30] sm:$0xff]  ;;  %v547_v31 = vld [vmem:[#allocation9 + $0x8] sm:$0xff]  ;;  %v2045_v34 = vld [vmem:[%s2015_s30 + $0x10] sm:$0xff] }
  0x8a   : > { %1375 = vmatprep.subr.mxu0 %v448_v10  ;;  %1412 = vmatpush3.msra.mxu1 %v557_v9  ;;  %v438_v30 = vld [vmem:[#allocation8] sm:$0xff]  ;;  %v2042_v32 = vld [vmem:[%s2015_s30 + $0x8] sm:$0xff]  ;;  %v2050_v35 = vld [vmem:[%s2015_s30 + $0x18] sm:$0xff] }
  0x8b   : > { %1376 = vmatpush3.msra.mxu0 %v448_v10  ;;  %1413 = vmatprep.subr.mxu1 %v556_v11  ;;  %v546_v33 = vld [vmem:[#allocation9] sm:$0xff]  ;;  %v2068_v56 = vld [vmem:[%s2023_s19 + $0x8] sm:$0xff]  }
  0x8c   : > { %1377 = vmatprep.subr.mxu0 %v447_v12  ;;  %1414 = vmatpush3.msra.mxu1 %v556_v11  ;;  %v1276_v36 = vld [vmem:[%s2183_s3] ss:$0 sm:$0xff]  ;;  %v1307_v58 = vunpack.c.h.bf16 %v2068_v56  ;;  %v1306_v60 = vunpack.c.l.bf16 %v2068_v56 }
  0x8d   : > { %1378 = vmatpush3.msra.mxu0 %v447_v12  ;;  %1415 = vmatprep.subr.mxu1 %v555_v13  ;;  %v1277_v42 = vld [vmem:[%s2185_s5] ss:$0 sm:$0xff] }
  0x8e   : > { %1379 = vmatprep.subr.mxu0 %v446_v14  ;;  %1416 = vmatpush3.msra.mxu1 %v555_v13  ;;  %v2064_v54 = vld [vmem:[%s2023_s19] sm:$0xff]   ;;  %vm807_vm3 = vcmp.gt.f32.partialorder %v1307_v58, 0.0  ;;  %vm806_vm4 = vcmp.gt.f32.partialorder %v1306_v60, 0.0  ;;  %s1687_s19 = sshll.u32 %s1769_s18, 4  ;;  %s1688_s19 = int_to_ptr.vmem [resolvable:$false] %s1687_s19 }
  0x8f   : > { %1380 = vmatpush3.msra.mxu0 %v446_v14  ;;  %1417 = vmatprep.subr.mxu1 %v554_v15  ;;  %v1303_v55 = vunpack.c.h.bf16 %v2064_v54  ;;  %v1302_v57 = vunpack.c.l.bf16 %v2064_v54  ;;  %v1283_v56 = vld [vmem:[%s2187_s7] ss:$0 sm:$0xff]  ;;  %s1689_s16 = scalar_lea.vmem %s1688_s19, 1024  ;;  %p1690_p9 = scmp.lt.s32.totalorder %s2137_s2, %s1688_s19 }
  0x90   : > { %1381 = vmatprep.subr.mxu0 %v445_v16  ;;  %1418 = vmatpush3.msra.mxu1 %v554_v15  ;;  %p1691_p13 = scmp.lt.s32.totalorder %s1689_s16, %s1683_s13 }
  0x91   : > { %1382 = vmatpush3.msra.mxu0 %v445_v16  ;;  %1419 = vmatprep.subr.mxu1 %v553_v17  ;;  %vm805_vm0 = vcmp.gt.f32.partialorder %v1303_v55, 0.0  ;;  %vm804_vm1 = vcmp.gt.f32.partialorder %v1302_v57, 0.0 }
  0x92   : > { %1383 = vmatprep.subr.mxu0 %v444_v18  ;;  %1420 = vmatpush3.msra.mxu1 %v553_v17  ;;  %p1692_p1 = por %p1691_p13, %p1690_p9 }
  0x93   : > { %1384 = vmatpush3.msra.mxu0 %v444_v18  ;;  %1421 = vmatprep.subr.mxu1 %v552_v19 }
  0x94   : > { %1385 = vmatprep.subr.mxu0 %v443_v20  ;;  %1422 = vmatpush3.msra.mxu1 %v552_v19  ;;  %p1693_p4 = pnand %p1692_p1, %p1686_p11 }
  0x95   : > { %1386 = vmatpush3.msra.mxu0 %v443_v20  ;;  %1423 = vmatprep.subr.mxu1 %v551_v21 }
  0x96   : > { %1387 = vmatprep.subr.mxu0 %v442_v22  ;;  %1424 = vmatpush3.msra.mxu1 %v551_v21 }
  0x97   : > { %1388 = vmatpush3.msra.mxu0 %v442_v22  ;;  %1425 = vmatprep.subr.mxu1 %v550_v23 }
  0x98   : > { %1389 = vmatprep.subr.mxu0 %v441_v24  ;;  %1426 = vmatpush3.msra.mxu1 %v550_v23 }
  0x99   : > { %1390 = vmatpush3.msra.mxu0 %v441_v24  ;;  %1427 = vmatprep.subr.mxu1 %v549_v25 }
  0x9a   : > { %1391 = vmatprep.subr.mxu0 %v440_v26  ;;  %1428 = vmatpush3.msra.mxu1 %v549_v25 }
  0x9b   : > { %1392 = vmatpush3.msra.mxu0 %v440_v26  ;;  %1429 = vmatprep.subr.mxu1 %v548_v27 }
  0x9c   : > { %1393 = vmatprep.subr.mxu0 %v439_v28  ;;  %1397 = vmatprep.mubr.f32.mxu0 %v2038_v29 }
  0x9d   : > { %1394 = vmatpush3.msra.mxu0 %v439_v28  ;;  %1430 = vmatpush3.msra.mxu1 %v548_v27 }
  0x9e   : > { %1395 = vmatprep.subr.mxu0 %v438_v30  ;;  %1431 = vmatprep.subr.mxu1 %v547_v31 }
  0x9f   : > { %1396 = vmatpush3.msra.mxu0 %v438_v30  ;;  %1432 = vmatpush3.msra.mxu1 %v547_v31 }
  0xa0   : > { %1398 = vmatmul.mubr.f32.vlgmr.msra.gmra.mxu0 %v2042_v32  ;;  %1433 = vmatprep.subr.mxu1 %v546_v33 }
  0xa1   : > { %1400 = vmatprep.mubr.f32.mxu0 %v2045_v34  ;;  %1434 = vmatpush3.msra.mxu1 %v546_v33 }
  0xa2   : > { %1435 = vmatprep.mubr.f32.mxu1 %v2038_v29 }
  0xa3   : > { %1436 = vmatmul.mubr.f32.vlgmr.msra.gmra.mxu1 %v2042_v32 }
  0xa4   : > { %1401 = vmatmul.mubr.f32.gmra.mxu0 %v2050_v35  ;;  %1438 = vmatprep.mubr.f32.mxu1 %v2045_v34 }
  0xa7   : > { %1439 = vmatmul.mubr.f32.gmra.mxu1 %v2050_v35 }
 0x160   : > { %v1399_v37 = vpop.f32.mrf.mxu0 }
 0x161   : > { %v533_v38 = vadd.f32 %v1399_v37, %v1276_v36 }
 0x162   : > { %v527_v39 = vpop.f32.mrf.mxu0 }
 0x163   : > { %v528_v40 = vadd.f32 %v1276_v36, %v527_v39  ;;  %1441 = vmatprep.subr.mxu0 %v533_v38  ;;  %v1437_v41 = vpop.f32.mrf.mxu1 }
 0x164   : > { %v1402_v43 = vpop.f32.mrf.mxu0  ;;  %1442 = vmatpush3.xpose.msra.mxu0 %v533_v38  ;;  %v641_v50 = vadd.f32 %v1437_v41, %v1277_v42 }
 0x165   : > { %v543_v44 = vadd.f32 %v1402_v43, %v1276_v36  ;;  %1443 = vmatprep.subr.mxu0 %v528_v40  ;;  %v635_v45 = vpop.f32.mrf.mxu1 }
 0x166   : > { %v537_v46 = vpop.f32.mrf.mxu0  ;;  %v636_v47 = vadd.f32 %v1277_v42, %v635_v45 }
 0x167   : > { %v538_v48 = vadd.f32 %v1276_v36, %v537_v46  ;;  %1448 = vmatprep.subr.mxu1 %v543_v44  ;;  %v1440_v49 = vpop.f32.mrf.mxu1 }
 0x168   : > { %1444 = vmatpush3.xpose.msra.mxu0 %v528_v40  ;;  %1449 = vmatpush3.xpose.msra.mxu1 %v543_v44  ;;  %v651_v53 = vadd.f32 %v1440_v49, %v1277_v42 }
 0x169   : > { %1445 = vmatprep.mubr.f32.mxu0 %v636_v47  ;;  %1450 = vmatprep.subr.mxu1 %v538_v48  ;;  %v645_v51 = vpop.f32.mrf.mxu1 }
 0x16a   : > { %1455 = vmatprep.subr.mxu0 %v533_v38  ;;  %v646_v52 = vadd.f32 %v1277_v42, %v645_v51 }
 0x16b   : > { %1446 = vmatmul.mubr.f32.vlgmr.msra.gmra.mxu0 %v641_v50 }
 0x16c   : > { %1451 = vmatpush3.xpose.msra.mxu1 %v538_v48  ;;  %1456 = vmatpush3.msra.mxu0 %v533_v38 }
 0x16d   : > { %1452 = vmatprep.mubr.f32.mxu1 %v646_v52  ;;  %1457 = vmatprep.subr.mxu0 %v528_v40 }
 0x16e   : > { %1462 = vmatprep.subr.mxu1 %v543_v44  ;;  %1458 = vmatpush3.msra.mxu0 %v528_v40 }
 0x16f   : > { %1453 = vmatmul.mubr.f32.vlgmr.msra.gmra.mxu1 %v651_v53 }
 0x170   : > { %1463 = vmatpush3.msra.mxu1 %v543_v44 }
 0x171   : > { %1464 = vmatprep.subr.mxu1 %v538_v48 }
 0x172   : > { %1465 = vmatpush3.msra.mxu1 %v538_v48 }
 0x22b   : > { %v1447_v59 = vpop.f32.mrf.mxu0 }
 0x22c   : > { %v809_v61 = vsel %vm805_vm0, %v1447_v59, -9e+15 }
 0x22d   : > { %v720_v62 = vpop.f32.mrf.mxu0  ;;  %v814_v0 = vsel %vm812_vm2, %v809_v61, -inf }
 0x22e   : > { %v808_v63 = vsel %vm804_vm1, %v720_v62, -9e+15 }
 0x22f   : > { %v813_v1 = vsel %vm812_vm2, %v808_v63, -inf  ;;  %v1454_v2 = vpop.f32.mrf.mxu1 }
 0x230   : > { %v815_v3 = vmax.f32 %v813_v1, %v814_v0  ;;  %v811_v4 = vsel %vm807_vm3, %v1454_v2, -9e+15 }
 0x231   : > { %v795_v5 = vpop.f32.mrf.mxu1  ;;  %v823_v8 = vsel %vm812_vm2, %v811_v4, -inf }
 0x232   : > { %v816_v6 = vrot.slane %v815_v3, 4  ;;  %v810_v7 = vsel %vm806_vm4, %v795_v5, -9e+15 }
 0x233   : > { %v822_v9 = vsel %vm812_vm2, %v810_v7, -inf }
 0x234   : > { %v817_v10 = vmax.f32 %v815_v3, %v816_v6  ;;  %v824_v11 = vmax.f32 %v822_v9, %v823_v8 }
 0x236   : > { %v818_v12 = vrot.slane %v817_v10, 2  ;;  %v825_v13 = vrot.slane %v824_v11, 4 }
 0x238   : > { %v819_v14 = vmax.f32 %v817_v10, %v818_v12  ;;  %v826_v15 = vmax.f32 %v824_v11, %v825_v13 }
 0x23a   : > { %v820_v16 = vrot.slane %v819_v14, 1  ;;  %v827_v17 = vrot.slane %v826_v15, 2 }
 0x23c   : > { %v821_v18 = vmax.f32 %v819_v14, %v820_v16  ;;  %v828_v19 = vmax.f32 %v826_v15, %v827_v17 }
 0x23e   : > { %v831_v20 = vsub.f32 %v808_v63, %v821_v18  ;;  %v832_v21 = vsub.f32 %v809_v61, %v821_v18  ;;  %v829_v22 = vrot.slane %v828_v19, 1 }
 0x240   : > { %v835_v23 = vmul.f32 1.442695, %v831_v20  ;;  %v837_v24 = vmul.f32 1.442695, %v832_v21  ;;  %v830_v25 = vmax.f32 %v828_v19, %v829_v22 }
 0x242   : > { %1547 = vpow2.f32 %v835_v23  ;;  %v833_v26 = vsub.f32 %v810_v7, %v830_v25  ;;  %v834_v27 = vsub.f32 %v811_v4, %v830_v25 }
 0x243   : > { %1549 = vpow2.f32 %v837_v24 }
 0x244   : > { %v839_v28 = vmul.f32 1.442695, %v833_v26  ;;  %v841_v30 = vmul.f32 1.442695, %v834_v27 }
 0x246   : > { %1551 = vpow2.f32 %v839_v28 }
 0x247   : > { %1553 = vpow2.f32 %v841_v30 }
 0x24f   : > { %v1548_v31 = vpop.eup %1547 }
 0x250   : > { %v1550_v33 = vpop.eup %1549  ;;  %v843_v36 = vsel %vm812_vm2, %v1548_v31, 0.0 }
 0x251   : > { %v844_v37 = vsel %vm812_vm2, %v1550_v33, 0.0 }
 0x252   : > { %v845_v38 = vadd.f32 %v844_v37, %v843_v36 }
 0x253   : > { %v1552_v39 = vpop.eup %1551 }
 0x254   : > { %v1554_v40 = vpop.eup %1553  ;;  %v846_v41 = vrot.slane %v845_v38, 4  ;;  %v852_v42 = vsel %vm812_vm2, %v1552_v39, 0.0 }
 0x255   : > { %v853_v43 = vsel %vm812_vm2, %v1554_v40, 0.0 }
 0x256   : > { %v847_v44 = vadd.f32 %v846_v41, %v845_v38  ;;  %v854_v45 = vadd.f32 %v853_v43, %v852_v42 }
 0x258   : > { %v848_v46 = vrot.slane %v847_v44, 2  ;;  %v855_v47 = vrot.slane %v854_v45, 4 }
 0x25a   : > { %v849_v48 = vadd.f32 %v848_v46, %v847_v44  ;;  %v856_v49 = vadd.f32 %v855_v47, %v854_v45 }
 0x25c   : > { %v850_v50 = vrot.slane %v849_v48, 1  ;;  %v857_v51 = vrot.slane %v856_v49, 2 }
 0x25e   : > { %v851_v52 = vadd.f32 %v850_v50, %v849_v48  ;;  %v858_v53 = vadd.f32 %v857_v51, %v856_v49 }
 0x260   : > { %1555 = vrcp.f32 %v851_v52  ;;  %v859_v59 = vrot.slane %v858_v53, 1 }
 0x262   : > { %v860_v61 = vadd.f32 %v859_v59, %v858_v53 }
 0x264   : > { %1557 = vrcp.f32 %v860_v61 }
 0x26d   : > { %v1556_v62 = vpop.eup %1555 }
 0x26e   : > { %v863_v63 = vmul.f32 %v1556_v62, %v851_v52 }
 0x270   : > { %v865_v0 = vsub.f32 2.0, %v863_v63 }
 0x271   : > { %v1558_v1 = vpop.eup %1557 }
 0x272   : > { %v867_v2 = vmul.f32 %v1556_v62, %v865_v0  ;;  %v864_v3 = vmul.f32 %v1558_v1, %v860_v61 }
 0x274   : > { %v869_v4 = vmul.f32 %v1548_v31, %v867_v2  ;;  %v870_v5 = vmul.f32 %v1550_v33, %v867_v2  ;;  %v866_v6 = vsub.f32 2.0, %v864_v3  ;;  %v1078_v31 = vstv %s1077_s10 }
 0x276   : > { %v873_v7 = vmul.f32 %v1302_v57, %v869_v4  ;;  %v868_v8 = vmul.f32 %v1558_v1, %v866_v6  ;;  %v874_v9 = vmul.f32 %v1303_v55, %v870_v5  ;;  %v1282_v55 = vld [vmem:[%s2186_s6] ss:$0 sm:$0xff] }
 0x277   : > { %v1050_v16 = vmul.f32 %v1282_v55, %v2038_v29  ;;  %v1052_v18 = vmul.f32 %v1282_v55, %v2045_v34  ;;  %v1051_v19 = vmul.f32 %v1282_v55, %v2042_v32  ;;  %v1053_v28 = vmul.f32 %v1282_v55, %v2050_v35 }
 0x278   : > { %v871_v10 = vmul.f32 %v1552_v39, %v868_v8  ;;  %v872_v11 = vmul.f32 %v1554_v40, %v868_v8  ;;  %1459 = vmatprep.mubr.msk.f32.mxu0 %vm812_vm2, %v873_v7 }
 0x279   : > { %1460 = vmatmul.mubr.msk.f32.vlgmr.msra.gmra.mxu0 %vm812_vm2, %v874_v9 }
 0x27a   : > { %v875_v12 = vmul.f32 %v1306_v60, %v871_v10  ;;  %v876_v13 = vmul.f32 %v1307_v58, %v872_v11 }
 0x27c   : > { %1466 = vmatprep.mubr.msk.f32.mxu1 %vm812_vm2, %v875_v12 }
 0x27d   : > { %1467 = vmatmul.mubr.msk.f32.vlgmr.msra.gmra.mxu1 %vm812_vm2, %v876_v13 }
 0x339   : > { %v2101_v57 = vpop.f32.mrf.mxu0 }
 0x33a   : > { %v1040_v14 = vmax.f32 %v2101_v57, 0.0 }
 0x33b   : > { %v949_v54 = vpop.f32.mrf.mxu0 }
 0x33c   : > { %v1039_v15 = vmax.f32 %v949_v54, 0.0  ;;  %v1062_v20 = vmul.f32 %v1283_v56, %v1040_v14 }
 0x33d   : > { %v2111_v58 = vpop.f32.mrf.mxu1 }
 0x33e   : > { %v1061_v60 = vmul.f32 %v1283_v56, %v1039_v15  ;;  %v1042_v21 = vmax.f32 %v2111_v58, 0.0  ;;  %v1066_v27 = vadd.f32 %v1062_v20, %v1051_v19 }
 0x33f   : > { %v1030_v17 = vpop.f32.mrf.mxu1 }
 0x340   : > { %v1041_v22 = vmax.f32 %v1030_v17, 0.0  ;;  %v1065_v23 = vadd.f32 %v1061_v60, %v1050_v16  ;;  %v1064_v25 = vmul.f32 %v1283_v56, %v1042_v21 }
 0x342   : > { %v1063_v24 = vmul.f32 %v1283_v56, %v1041_v22  ;;  %1069 = vadd.xlane.f32.xlu0 %v1065_v23  ;;  %v1068_v30 = vadd.f32 %v1064_v25, %v1053_v28 }
 0x344   : > { %v1067_v26 = vadd.f32 %v1063_v24, %v1052_v18 }
 0x346   : > { %1073 = vadd.xlane.f32.xlu1 %v1067_v26  ;;  %1071 = vadd.xlane.f32.xlu0 %v1066_v27 }
 0x34a   : > { %1075 = vadd.xlane.f32.xlu1 %v1068_v30 }
 0x3cb   : > { %v1070_v33 = vpop.xlane.xlu0 %1069 }
 0x3cc   : > { %v1079_v36 = vadd.f32 %v1078_v31, %v1070_v33 }
 0x3ce   : > { %v1284_v37 = vmul.f32 -1.442695, %v1079_v36 }
 0x3cf   : > { %v1074_v38 = vpop.xlane.xlu1 %1073  ;;  %v1072_v39 = vpop.xlane.xlu0 %1071 }
 0x3d0   : > { %1559 = vpow2.f32 %v1284_v37  ;;  %v1081_v40 = vadd.f32 %v1078_v31, %v1074_v38  ;;  %v1080_v41 = vadd.f32 %v1078_v31, %v1072_v39 }
 0x3d2   : > { %v1286_v42 = vmul.f32 -1.442695, %v1081_v40  ;;  %v1285_v43 = vmul.f32 -1.442695, %v1080_v41 }
 0x3d3   : > { %v1076_v44 = vpop.xlane.xlu1 %1075 }
 0x3d4   : > { %1561 = vpow2.f32 %v1286_v42  ;;  %v1082_v45 = vadd.f32 %v1078_v31, %v1076_v44 }
 0x3d5   : > { %1563 = vpow2.f32 %v1285_v43 }
 0x3d6   : > { %v1287_v46 = vmul.f32 -1.442695, %v1082_v45 }
 0x3d8   : > { %1565 = vpow2.f32 %v1287_v46 }
 0x3dd   : > { %v1560_v47 = vpop.eup %1559 }
 0x3de   : > { %v1095_v48 = vadd.f32 1.0, %v1560_v47 }
 0x3e0   : > { %1567 = vrcp.f32 %v1095_v48 }
 0x3e1   : > { %v1562_v49 = vpop.eup %1561 }
 0x3e2   : > { %v1564_v50 = vpop.eup %1563  ;;  %v1097_v51 = vadd.f32 1.0, %v1562_v49 }
 0x3e3   : > { %v1096_v52 = vadd.f32 1.0, %v1564_v50 }
 0x3e4   : > { %1569 = vrcp.f32 %v1097_v51 }
 0x3e5   : > { %v1566_v53 = vpop.eup %1565  ;;  %1571 = vrcp.f32 %v1096_v52 }
 0x3e6   : > { %v1098_v59 = vadd.f32 1.0, %v1566_v53 }
 0x3e8   : > { %1573 = vrcp.f32 %v1098_v59 }
 0x3ed   : > { %v1568_v61 = vpop.eup %1567 }
 0x3ee   : > { %v1111_v62 = vsub.f32 1.0, %v1568_v61  ;;  %v1107_v63 = vmul.f32 %v1568_v61, %v2038_v29 }
 0x3f0   : > { %v1115_v0 = vmul.f32 %v1111_v62, %v1039_v15 }
 0x3f1   : > { %v1570_v1 = vpop.eup %1569 }
 0x3f2   : > { %v1572_v2 = vpop.eup %1571  ;;  %v1119_v3 = vadd.f32 %v1115_v0, %v1107_v63  ;;  %v1113_v4 = vsub.f32 1.0, %v1570_v1  ;;  %v1109_v6 = vmul.f32 %v1570_v1, %v2045_v34 }
 0x3f3   : > { %v1112_v5 = vsub.f32 1.0, %v1572_v2  ;;  %v1108_v9 = vmul.f32 %v1572_v2, %v2042_v32 }
 0x3f4   : > { %v1117_v7 = vmul.f32 %v1113_v4, %v1041_v22  ;;  %1123 = vst [vmem:[%s422_s15] sm:$0xff] %v1119_v3 }
 0x3f5   : > { %v1574_v8 = vpop.eup %1573  ;;  %v1116_v29 = vmul.f32 %v1112_v5, %v1040_v14 }
 0x3f6   : > { %v1121_v10 = vadd.f32 %v1117_v7, %v1109_v6  ;;  %v1114_v11 = vsub.f32 1.0, %v1574_v8  ;;  %v1110_v13 = vmul.f32 %v1574_v8, %v2050_v35 }
 0x3f7   : > { %v1120_v12 = vadd.f32 %v1116_v29, %v1108_v9 }
 0x3f8   : > { %v1118_v34 = vmul.f32 %v1114_v11, %v1042_v21  ;;  %1125 = vst [vmem:[%s422_s15 + $0x10] sm:$0xff] %v1121_v10 }
 0x3f9   : > { %1124 = vst [vmem:[%s422_s15 + $0x8] sm:$0xff] %v1120_v12 }
 0x3fa   : > { %v1122_v32 = vadd.f32 %v1118_v34, %v1110_v13 }
 0x3fc   : > { %1126 = vst [vmem:[%s422_s15 + $0x18] sm:$0xff] %v1122_v32 }
 0x3fd   : > { %1696 = shalt.err (!%p1693_p4)
}
 0x3fe   : > { %s1697_s26 = scalar_lea.hbm %s2135_s0, 512  ;;  %s1701_s4 = scalar_lea.hbm %s2189_s9, 1024 }
 0x3ff   : > { %p1698_p5 = scmp.ne.s32.totalorder %s2135_s0, %s1697_s26  ;;  %p1702_p2 = scmp.lt.s32.totalorder %s2135_s0, %s2189_s9 }
 0x400   : > { %p1703_p6 = scmp.lt.s32.totalorder %s1701_s4, %s1697_s26 }
 0x401   : > { %p1699_p7 = pnand %p1698_p5, %p2222_p10 }
 0x402   : > { %p1704_p12 = por %p1703_p6, %p1702_p2 }
 0x403   : > { %p1700_p8 = pneg %p1699_p7 }
 0x405   : > { %p1705_p0 = pnand %p1704_p12, %p1700_p8 }
 0x407   : > { %1708 = shalt.err (!%p1705_p0)
}
 0x408   : > { %s1770_s29 = smov 128   ;;  %s1771_s10 = smov 8  }
 0x409   : > { %1481 = dma.vmem_to_hbm [thread:$0]  (%p2222_p10), %s2137_s2, 512, %s2135_s0, %s1128_s8, %s1770_s29, %s1770_s29, %s1771_s10  }
 0x40a PF: > { %s1157_s15 = sand.u32 1, %s1747_s11   ;;  %p2223_p3 = scmp.ne.s32.totalorder %s2203_s17, 0 }
 0x40b   : > { %p2224_p11 = scmp.ge.s32.totalorder %s1759_s14, 2  ;;  %s1158_s25 = scalar_lea.sflag [#allocation5], %s1157_s15 }
 0x40d   : > { %p1498_p9 = pnand %p2224_p11, %p2223_p3 }
 0x40f   : > { %p1499_p13 = pneg %p1498_p9 }
 0x411   : > { %1742 = dma.done.wait (%p1499_p13), %s1158_s25, 512  }
 0x412   : > { %1744 = vsyncadd (%p1499_p13), %s1158_s25, 4294966784  ;;  %s2225_s14 = sld [smem:[#allocation18_spill]]  ;;  %s2228_s11 = smov %s1751_s12 }
 0x413   : > { %s2226_s27 = sld [smem:[#allocation17_spill]] }
 0x414   : > { %s2227_s13 = sld [smem:[#allocation19_spill]] }
 0x418   : > { %p27_p1 = scmp.ge.s32.totalorder %s2225_s14, 4  }
 0x419   : > { %s2229_s12 = smov %s2226_s27 }
 0x41a   :  { %29 = sbr.rel (!%p27_p1) target bundleno = 13 (0xd), region = 122 }
 0x41f   :  { %1163 = vsyncpa [#allocation4], 1 }
 0x420   :  { %1165 = vsyncpa [#allocation4 + $0x1], 1 }
 0x421   :  { %1166 = vsyncpa [#allocation7], 1 }
 0x422   :  { %1168 = vsyncpa [#allocation7 + $0x1], 1 }
 0x423   :  { %1169 = vsyncpa [#allocation10], 1 }
 0x424   :  { %1170 = vsyncpa [#allocation5], 1 }
 0x425   :  { %1172 = vsyncpa [#allocation5 + $0x1], 1 }

</bundles_post_ra>
